<compile_context>
chip_gen: v7x
topology: tpu7x:2x2x1
jax: 0.10.0
libtpu: 0.0.40
codegen_flags: <defaults>
</compile_context>

<pallas_src>
import functools

import jax
import jax.numpy as jnp
import numpy as np
from jax.experimental import pallas as pl
from jax.experimental.pallas import tpu as pltpu

# Row layout of the packed per-feature parameter slab (8, Dop).
_ROW_BIAS, _ROW_GAMMA, _ROW_BETA, _ROW_RMEAN, _ROW_RVAR = 0, 1, 2, 3, 4


def _round_up(x, m):
    return (x + m - 1) // m * m


def _pad_feature_dim(d):
    # Lane-dense padding: 128 minimum; for larger dims align to 256 so the
    # v6e/v7x 2x256 MXU runs full systolic passes (v5e 4x128 satisfied either way).
    return _round_up(d, 128) if d <= 128 else _round_up(d, 256)


def txtnet_kernel(x_ref, w_ref, p_ref, o_ref, *,
                  batch_norm, use_batch_stats, activation, eps, true_batch):
    """Fused Linear -> BatchNorm1d -> activation, single invocation.

    x_ref : (Bp, Dip)  padded input (bf16/f32), lane-dense
    w_ref : (Dip, Dop) padded fc1 weight (bf16/f32)
    p_ref : (8, Dop)   packed f32 params: bias / gamma / beta / rmean / rvar
    o_ref : (Bp, Dop)  output
    """
    # Linear: one lane-dense MXU matmul with f32 accumulation.
    y = jnp.dot(x_ref[...], w_ref[...], preferred_element_type=jnp.float32)
    y = y + p_ref[_ROW_BIAS:_ROW_BIAS + 1, :]

    if batch_norm:
        if use_batch_stats:
            # PyTorch training-mode BN: biased batch statistics over the true
            # (unpadded) rows.  Mask built in-kernel from the *static* batch
            # size -> a couple of VPU ops, no extra DMA'd input.
            bp, dop = y.shape
            row = jax.lax.broadcasted_iota(jnp.int32, (bp, dop), 0)
            wrow = jnp.where(row < true_batch, 1.0 / true_batch, 0.0)
            mean = jnp.sum(wrow * y, axis=0, keepdims=True)      # (1, Dop)
            diff = y - mean
            var = jnp.sum(wrow * diff * diff, axis=0, keepdims=True)
        else:
            # eval-mode BN: running statistics.
            mean = p_ref[_ROW_RMEAN:_ROW_RMEAN + 1, :]
            var = p_ref[_ROW_RVAR:_ROW_RVAR + 1, :]
        y = (y - mean) * jax.lax.rsqrt(var + eps)                # rsqrt -> EUP
        y = y * p_ref[_ROW_GAMMA:_ROW_GAMMA + 1, :] + p_ref[_ROW_BETA:_ROW_BETA + 1, :]

    if activation == "tanh":
        y = jnp.tanh(y)                                          # EUP
    elif activation == "relu":
        y = jnp.maximum(y, 0.0)

    # TODO(synk): train-mode nn.Dropout (stochastic) not implemented; inference
    # forward treats it as identity.
    o_ref[...] = y.astype(o_ref.dtype)


def prepare_txtnet_params(w, b, gamma, beta, running_mean, running_var, *,
                          mxu_dtype=jnp.bfloat16):
    """Pad / pack call-invariant parameters ONCE; reuse across forward calls.

    w : (D_in, D_out) Linear weight (already transposed vs torch's (out, in)).
    Returns (w_padded, packed_params, (D_in, D_out)).
    """
    D_in, D_out = w.shape
    Dip = _pad_feature_dim(D_in)
    Dop = _pad_feature_dim(D_out)
    # Cast before padding so the pad temp is already half-width for bf16.
    w_p = jnp.pad(w.astype(mxu_dtype), ((0, Dip - D_in), (0, Dop - D_out)))
    packed = jnp.stack([b, gamma, beta, running_mean, running_var],
                       axis=0).astype(jnp.float32)               # (5, D_out)
    packed_p = jnp.pad(packed, ((0, 8 - packed.shape[0]), (0, Dop - D_out)))
    return w_p, packed_p, (D_in, D_out)


def txtnet_forward(x, w_p, packed_p, dims, *, batch_norm=True,
                   use_batch_stats=True, activation="tanh", eps=1e-5,
                   out_dtype=jnp.float32):
    """TxtNet forward: identity encoder + (Linear -> BN -> activation)."""
    B = x.shape[0]
    D_in, D_out = dims
    Dip, Dop = w_p.shape
    assert x.shape[1] == D_in
    Bp = _round_up(max(B, 1), 8)

    # Cast to the MXU dtype before padding (half-width temp + DMA bytes).
    x_p = jnp.pad(x.astype(w_p.dtype), ((0, Bp - B), (0, Dip - D_in)))

    kernel = functools.partial(
        txtnet_kernel, batch_norm=batch_norm, use_batch_stats=use_batch_stats,
        activation=activation, eps=eps, true_batch=B)

    # Explicit VMEM budget (matters on v5e's 16 MiB default scoped VMEM):
    # double-buffered in/out, 2x headroom, clamped to v7x's 64 MiB physical.
    in_itm = jnp.dtype(w_p.dtype).itemsize
    out_itm = jnp.dtype(out_dtype).itemsize
    need = 2 * (Bp * Dip * in_itm + Dip * Dop * in_itm + 8 * Dop * 4
                + Bp * Dop * out_itm)
    vmem_limit = int(min(max(2 * need, 16 * 1024 * 1024), 64 * 1024 * 1024))

    out_p = pl.pallas_call(
        kernel,
        out_shape=jax.ShapeDtypeStruct((Bp, Dop), out_dtype),
        grid=(1,),
        in_specs=[
            pl.BlockSpec((Bp, Dip), lambda i: (0, 0)),     # x
            pl.BlockSpec((Dip, Dop), lambda i: (0, 0)),    # W
            pl.BlockSpec((8, Dop), lambda i: (0, 0)),      # packed b/g/b/rm/rv
        ],
        out_specs=pl.BlockSpec((Bp, Dop), lambda i: (0, 0)),
        compiler_params=pltpu.CompilerParams(
            dimension_semantics=("parallel",),
            vmem_limit_bytes=vmem_limit),
    )(x_p, w_p, packed_p)

    # TODO(synk): for very large txt_fc_layers the single-block W won't fit
    # v7x's 64 MiB VMEM; tile D_out ("parallel") / D_in ("arbitrary" + f32
    # accumulator) while keeping the batch un-tiled so BN batch stats stay correct.
    return out_p[:B, :D_out]


def txtnet_ref(x, w, b, gamma, beta, rmean, rvar, *, batch_norm=True,
               use_batch_stats=True, activation="tanh", eps=1e-5,
               mxu_dtype=jnp.float32):
    """Pure-JAX reference mirroring the PyTorch forward (operands cast to
    mxu_dtype to mirror the kernel's MXU input precision, f32 accumulation)."""
    xf = x.astype(mxu_dtype).astype(jnp.float32)
    wf = w.astype(mxu_dtype).astype(jnp.float32)
    y = xf @ wf + b.reshape(1, -1).astype(jnp.float32)
    if batch_norm:
        if use_batch_stats:
            mean = jnp.mean(y, axis=0, keepdims=True)
            var = jnp.mean((y - mean) ** 2, axis=0, keepdims=True)   # biased
        else:
            mean = rmean.reshape(1, -1)
            var = rvar.reshape(1, -1)
        y = (y - mean) / jnp.sqrt(var + eps)
        y = y * gamma.reshape(1, -1) + beta.reshape(1, -1)
    if activation == "tanh":
        y = jnp.tanh(y)
    elif activation == "relu":
        y = jnp.maximum(y, 0.0)
    return y


if __name__ == "__main__":
    # Small deterministic config: opt.txt_fc_layers = [64, 96],
    # opt.batch_norm = True, opt.activation = 'tanh', dropout -> inference.
    B, D_in, D_out = 5, 64, 96

    key = jax.random.PRNGKey(0)
    k_x, k_w, k_rm, k_rv = jax.random.split(key, 4)

    x = jax.random.normal(k_x, (B, D_in), jnp.float32)

    # Linear params: Xavier-uniform weight (as _initialize_weights), zero bias.
    limit = float(np.sqrt(6.0 / (D_in + D_out)))
    w = jax.random.uniform(k_w, (D_in, D_out), jnp.float32, -limit, limit)
    b = jnp.zeros((D_out,), jnp.float32)

    # BatchNorm1d params: weight=1, bias=0 (module init); some running stats.
    gamma = jnp.ones((D_out,), jnp.float32)
    beta = jnp.zeros((D_out,), jnp.float32)
    running_mean = 0.1 * jax.random.normal(k_rm, (D_out,), jnp.float32)
    running_var = 1.0 + 0.1 * jax.random.uniform(k_rv, (D_out,), jnp.float32)

    # Pre-pad / pack call-invariant parameters once (bf16 MXU operands).
    mxu_dtype = jnp.bfloat16
    w_p, packed_p, dims = prepare_txtnet_params(
        w, b, gamma, beta, running_mean, running_var, mxu_dtype=mxu_dtype)
    w_p, packed_p = jax.block_until_ready((w_p, packed_p))

    # 1) default module state (training=True): BN uses batch statistics.
    out_tr = jax.block_until_ready(
        txtnet_forward(x, w_p, packed_p, dims, batch_norm=True,
                       use_batch_stats=True, activation="tanh"))
    ref_tr = txtnet_ref(x, w, b, gamma, beta, running_mean, running_var,
                        batch_norm=True, use_batch_stats=True,
                        activation="tanh", mxu_dtype=mxu_dtype)
    np.testing.assert_allclose(np.asarray(out_tr), np.asarray(ref_tr),
                               rtol=2e-3, atol=2e-4)

    # 2) eval mode: BN uses running statistics, dropout is identity.
    out_ev = jax.block_until_ready(
        txtnet_forward(x, w_p, packed_p, dims, batch_norm=True,
                       use_batch_stats=False, activation="tanh"))
    ref_ev = txtnet_ref(x, w, b, gamma, beta, running_mean, running_var,
                        batch_norm=True, use_batch_stats=False,
                        activation="tanh", mxu_dtype=mxu_dtype)
    np.testing.assert_allclose(np.asarray(out_ev), np.asarray(ref_ev),
                               rtol=2e-3, atol=2e-4)

    # Loose sanity check of the bf16-MXU path against exact f32 semantics.
    ref_f32 = txtnet_ref(x, w, b, gamma, beta, running_mean, running_var,
                         batch_norm=True, use_batch_stats=False,
                         activation="tanh", mxu_dtype=jnp.float32)
    np.testing.assert_allclose(np.asarray(out_ev), np.asarray(ref_f32),
                               rtol=5e-2, atol=5e-2)

    print("KERNEL_OK")
</pallas_src>

<mosaic_0001>
module attributes {stable_mosaic.version = 11 : i64} {
  func.func @txtnet_kernel(%arg0: i32, %arg1: memref<8x128xbf16, #tpu.memory_space<vmem>>, %arg2: memref<128x128xbf16, #tpu.memory_space<vmem>>, %arg3: memref<8x128xf32, #tpu.memory_space<vmem>>, %arg4: memref<8x128xf32, #tpu.memory_space<vmem>>) attributes {dimension_semantics = [#tpu.dimension_semantics<parallel>], iteration_bounds = array<i64: 1>, scalar_prefetch = 0 : i64, scratch_operands = 0 : i64, tpu.core_type = #tpu.core_type<tc>, window_params = [{pipeline_mode = #tpu.pipeline_mode<synchronous>, transform_indices = @transform_0, window_bounds = array<i64: 8, 128>}, {pipeline_mode = #tpu.pipeline_mode<synchronous>, transform_indices = @transform_1, window_bounds = array<i64: 128, 128>}, {pipeline_mode = #tpu.pipeline_mode<synchronous>, transform_indices = @transform_2, window_bounds = array<i64: 8, 128>}, {pipeline_mode = #tpu.pipeline_mode<synchronous>, transform_indices = @transform_3, window_bounds = array<i64: 8, 128>}]} {
    %c0 = arith.constant 0 : index
    %c0_0 = arith.constant 0 : index
    %0 = vector.load %arg1[%c0, %c0_0] : memref<8x128xbf16, #tpu.memory_space<vmem>>, vector<8x128xbf16>
    %c0_1 = arith.constant 0 : index
    %c0_2 = arith.constant 0 : index
    %1 = vector.load %arg2[%c0_1, %c0_2] : memref<128x128xbf16, #tpu.memory_space<vmem>>, vector<128x128xbf16>
    %cst = arith.constant dense<0.000000e+00> : vector<8x128xf32>
    %2 = tpu.matmul %0, %1, %cst {dimension_numbers = #tpu.dot_dimension_numbers<[1], [0], [0], [1], [0, 0, 1, 1], [], []>} : vector<8x128xbf16>, vector<128x128xbf16>, vector<8x128xf32> -> vector<8x128xf32>
    %c0_3 = arith.constant 0 : index
    %c0_4 = arith.constant 0 : index
    %3 = vector.load %arg3[%c0_3, %c0_4] : memref<8x128xf32, #tpu.memory_space<vmem>>, vector<1x128xf32>
    %4 = vector.broadcast %3 : vector<1x128xf32> to vector<8x128xf32>
    %5 = arith.addf %2, %4 : vector<8x128xf32>
    %6 = tpu.iota {dimensions = array<i32: 0>} : vector<8x128xi32>
    %c5_i32 = arith.constant 5 : i32
    %7 = vector.broadcast %c5_i32 : i32 to vector<8x128xi32>
    %8 = arith.cmpi slt, %6, %7 : vector<8x128xi32>
    %cst_5 = arith.constant 2.000000e-01 : f32
    %cst_6 = arith.constant 0.000000e+00 : f32
    %9 = vector.broadcast %cst_5 : f32 to vector<8x128xf32>
    %10 = vector.broadcast %cst_6 : f32 to vector<8x128xf32>
    %11 = arith.select %8, %9, %10 : vector<8x128xi1>, vector<8x128xf32>
    %12 = arith.mulf %11, %5 : vector<8x128xf32>
    %cst_7 = arith.constant dense<0.000000e+00> : vector<128xf32>
    %13 = vector.multi_reduction <add>, %12, %cst_7 [0] : vector<8x128xf32> to vector<128xf32>
    %14 = vector.shape_cast %13 : vector<128xf32> to vector<1x128xf32>
    %15 = vector.broadcast %14 : vector<1x128xf32> to vector<8x128xf32>
    %16 = arith.subf %5, %15 : vector<8x128xf32>
    %17 = arith.mulf %11, %16 : vector<8x128xf32>
    %18 = arith.mulf %17, %16 : vector<8x128xf32>
    %cst_8 = arith.constant dense<0.000000e+00> : vector<128xf32>
    %19 = vector.multi_reduction <add>, %18, %cst_8 [0] : vector<8x128xf32> to vector<128xf32>
    %20 = vector.shape_cast %19 : vector<128xf32> to vector<1x128xf32>
    %21 = vector.broadcast %14 : vector<1x128xf32> to vector<8x128xf32>
    %22 = arith.subf %5, %21 : vector<8x128xf32>
    %cst_9 = arith.constant 9.99999974E-6 : f32
    %23 = vector.broadcast %cst_9 : f32 to vector<1x128xf32>
    %24 = arith.addf %20, %23 : vector<1x128xf32>
    %25 = math.rsqrt %24 : vector<1x128xf32>
    %26 = vector.broadcast %25 : vector<1x128xf32> to vector<8x128xf32>
    %27 = arith.mulf %22, %26 : vector<8x128xf32>
    %c1 = arith.constant 1 : index
    %c0_10 = arith.constant 0 : index
    %28 = vector.load %arg3[%c1, %c0_10] : memref<8x128xf32, #tpu.memory_space<vmem>>, vector<1x128xf32>
    %29 = vector.broadcast %28 : vector<1x128xf32> to vector<8x128xf32>
    %30 = arith.mulf %27, %29 : vector<8x128xf32>
    %c2 = arith.constant 2 : index
    %c0_11 = arith.constant 0 : index
    %31 = vector.load %arg3[%c2, %c0_11] : memref<8x128xf32, #tpu.memory_space<vmem>>, vector<1x128xf32>
    %32 = vector.broadcast %31 : vector<1x128xf32> to vector<8x128xf32>
    %33 = arith.addf %30, %32 : vector<8x128xf32>
    %34 = math.tanh %33 : vector<8x128xf32>
    %c0_12 = arith.constant 0 : index
    %c0_13 = arith.constant 0 : index
    %35 = vector.load %arg4[%c0_12, %c0_13] : memref<8x128xf32, #tpu.memory_space<vmem>>, vector<8x128xf32>
    tpu.vector_store %arg4[%c0_12, %c0_13], %34 {strides = array<i32>} : memref<8x128xf32, #tpu.memory_space<vmem>>, vector<8x128xf32>,
    return
  }
  func.func @transform_0(%arg0: i32) -> (i32, i32) {
    %c0_i32 = arith.constant 0 : i32
    %c0_i32_0 = arith.constant 0 : i32
    %c0_i32_1 = arith.constant 0 : i32
    return %c0_i32, %c0_i32_0 : i32, i32
  }
  func.func @transform_1(%arg0: i32) -> (i32, i32) {
    %c0_i32 = arith.constant 0 : i32
    %c0_i32_0 = arith.constant 0 : i32
    %c0_i32_1 = arith.constant 0 : i32
    return %c0_i32, %c0_i32_0 : i32, i32
  }
  func.func @transform_2(%arg0: i32) -> (i32, i32) {
    %c0_i32 = arith.constant 0 : i32
    %c0_i32_0 = arith.constant 0 : i32
    %c0_i32_1 = arith.constant 0 : i32
    return %c0_i32, %c0_i32_0 : i32, i32
  }
  func.func @transform_3(%arg0: i32) -> (i32, i32) {
    %c0_i32 = arith.constant 0 : i32
    %c0_i32_0 = arith.constant 0 : i32
    %c0_i32_1 = arith.constant 0 : i32
    return %c0_i32, %c0_i32_0 : i32, i32
  }
}

</mosaic_0001>

<bundles_post_ra>
// kernel: tpu_custom_call.1
= control target key start
LH: loop header
LB: loop body
LE: loop exit
PB: predicated region body
PF: predicated region fallthrough
CT: control target
= control target key end

     0   :  { %8 = vsyncpa [#allocation3], 0  ;;  %s446_s0 = inlined_call_operand.hbm [shape: bf16[8,128], index: 0, kind: input, shape index: {}]   ;;  %s447_s1 = inlined_call_operand.hbm [shape: bf16[128,128], index: 1, kind: input, shape index: {}]   ;;  %s448_s2 = inlined_call_operand.hbm [shape: f32[8,128], index: 2, kind: input, shape index: {}]   ;;  %s449_s3 = inlined_call_operand.hbm [shape: f32[8,128], index: 3, kind: output, shape index: {}]  }
   0x1   :  { %9 = vsyncpa [#allocation6], 0 }
   0x2   :  { %10 = vsyncpa [#allocation4], 0  ;;  %s370_s12 = smov [#allocation5]   ;;  %s276_s16 = scalar_lea.hbm %s447_s1, 1024 }
   0x3   :  { %s26_s13 = sshll.u32 %s370_s12, 4  ;;  %p277_p0 = scmp.ne.s32.totalorder %s447_s1, %s276_s16  ;;  %s27_s13 = int_to_ptr.vmem [resolvable:$true] %s26_s13 }
   0x4   :  { %p280_p1 = scmp.lt.u32.totalorder %s276_s16, %s447_s1 }
   0x6   :  { %p282_p2 = pnand %p280_p1, %p277_p0 }
   0x8   :  { %285 = shalt.err (!%p282_p2)
}
   0x9   :  { %s286_s21 = scalar_lea.vmem %s27_s13, 1024  ;;  %p291_p4 = scmp.lt.s32.totalorder %s27_s13, %s27_s13 }
   0xa   :  { %p287_p3 = scmp.ne.s32.totalorder %s27_s13, %s286_s21  ;;  %p292_p5 = scmp.lt.s32.totalorder %s286_s21, %s286_s21 }
   0xc   :  { %p293_p6 = por %p292_p5, %p291_p4 }
   0xe   :  { %p294_p7 = pnand %p293_p6, %p287_p3 }
  0x10   :  { %297 = shalt.err (!%p294_p7)
}
  0x11   :  { %s371_s22 = smov 64   ;;  %s372_s23 = smov 4  }
  0x12   :  { %32 = dma.hbm_to_vmem [thread:$0]  %s447_s1, 1024, %s27_s13, [#allocation6], %s371_s22, %s371_s22, %s372_s23  }
  0x13   :  { %s373_s26 = smov [#allocation2]   ;;  %s374_s28 = smov [#allocation7]  }
  0x14   :  { %s17_s27 = sshll.u32 %s373_s26, 4  ;;  %s39_s29 = sshll.u32 %s374_s28, 4  ;;  %s18_s27 = int_to_ptr.vmem [resolvable:$true] %s17_s27  ;;  %s40_s29 = int_to_ptr.vmem [resolvable:$true] %s39_s29 }
  0x15   :  { %s298_s5 = scalar_lea.hbm %s446_s0, 64 }
  0x16   :  { %p299_p8 = scmp.ne.s32.totalorder %s446_s0, %s298_s5  ;;  %p302_p9 = scmp.lt.u32.totalorder %s298_s5, %s446_s0 }
  0x18   :  { %p304_p10 = pnand %p302_p9, %p299_p8 }
  0x1a   :  { %307 = shalt.err (!%p304_p10)
}
  0x1b   :  { %s308_s1 = scalar_lea.vmem %s18_s27, 64  ;;  %p313_p12 = scmp.lt.s32.totalorder %s18_s27, %s18_s27 }
  0x1c   :  { %p309_p11 = scmp.ne.s32.totalorder %s18_s27, %s308_s1  ;;  %p314_p13 = scmp.lt.s32.totalorder %s308_s1, %s308_s1 }
  0x1e   :  { %p315_p0 = por %p314_p13, %p313_p12 }
  0x20   :  { %p316_p1 = pnand %p315_p0, %p309_p11 }
  0x22   :  { %319 = shalt.err (!%p316_p1)
}
  0x23   :  { %20 = dma.hbm_to_vmem [thread:$0]  %s446_s0, 64, %s18_s27, [#allocation3]  }
  0x24   :  { %s320_s14 = scalar_lea.hbm %s448_s2, 128 }
  0x25   :  { %p321_p2 = scmp.ne.s32.totalorder %s448_s2, %s320_s14  ;;  %p324_p3 = scmp.lt.u32.totalorder %s320_s14, %s448_s2 }
  0x27   :  { %p326_p4 = pnand %p324_p3, %p321_p2 }
  0x29   :  { %329 = shalt.err (!%p326_p4)
}
  0x2a   :  { %s330_s19 = scalar_lea.vmem %s40_s29, 128  ;;  %p335_p6 = scmp.lt.s32.totalorder %s40_s29, %s40_s29 }
  0x2b   :  { %p331_p5 = scmp.ne.s32.totalorder %s40_s29, %s330_s19  ;;  %p336_p7 = scmp.lt.s32.totalorder %s330_s19, %s330_s19 }
  0x2d   :  { %p337_p8 = por %p336_p7, %p335_p6 }
  0x2f   :  { %p338_p9 = pnand %p337_p8, %p331_p5 }
  0x31   :  { %341 = shalt.err (!%p338_p9)
}
  0x32   :  { %42 = dma.hbm_to_vmem [thread:$0]  %s448_s2, 128, %s40_s29, [#allocation6]  }
  0x33   :  { %364 = dma.done.wait [#allocation3], 64  }
  0x34   :  { %365 = vsyncadd [#allocation3], 4294967232 }
  0x35   :  { %366 = dma.done.wait [#allocation6], 1152  }
  0x36   :  { %367 = vsyncadd [#allocation6], 4294966144  ;;  %v375_v0 = vmov 0.0   ;;  %vm376_vm0 = vmmov 0   ;;  %v264_v1 = vld [vmem:[#allocation5] sm:$0xff]   ;;  %v265_v2 = vld [vmem:[#allocation5 + $0x8] sm:$0xff]   ;;  %v163_v10 = vlaneseq }
  0x37   :  { %236 = vmatprep.subr.bf16.mxu0 %v375_v0  ;;  %252 = vmatprep.mubr.msk.bf16.mxu0 %vm376_vm0, %v375_v0  ;;  %v266_v3 = vld [vmem:[#allocation5 + $0x10] sm:$0xff]   ;;  %v267_v4 = vld [vmem:[#allocation5 + $0x18] sm:$0xff]   ;;  %v268_v5 = vld [vmem:[#allocation5 + $0x20] sm:$0xff]   ;;  %s377_s2 = smov [#allocation8]  }
  0x38   :  { %237 = vmatpush3.bf16.msra.mxu0 %v264_v1  ;;  %v269_v6 = vld [vmem:[#allocation5 + $0x28] sm:$0xff]   ;;  %v270_v7 = vld [vmem:[#allocation5 + $0x30] sm:$0xff]   ;;  %v271_v8 = vld [vmem:[#allocation5 + $0x38] sm:$0xff]   ;;  %v164_v11 = vshrl.u32 %v163_v10, 7  ;;  %s206_s21 = sshll.u32 %s377_s2, 4  ;;  %s207_s21 = int_to_ptr.vmem [resolvable:$true] %s206_s21 }
  0x39   :  { %238 = vmatprep.subr.bf16.mxu0 %v375_v0  ;;  %v53_v9 = vld [vmem:[#allocation2] sm:$0xf]  ;;  %v216_v12 = vld [vmem:[#allocation7] ss:$0 sm:$0xff]  ;;  %v225_v37 = vld [vmem:[#allocation7 + $0x1] ss:$0 sm:$0xff]  ;;  %p347_p11 = scmp.lt.s32.totalorder %s207_s21, %s207_s21 }
  0x3a   :  { %vm165_vm1 = vcmp.lt.s32.totalorder %v164_v11, 5  ;;  %v226_v39 = vld [vmem:[#allocation7 + $0x2] ss:$0 sm:$0xff]  ;;  %s342_s22 = scalar_lea.vmem %s207_s21, 128 }
  0x3b   :  { %v166_v14 = vsel %vm165_vm1, 0.2, %v375_v0  ;;  %p343_p10 = scmp.ne.s32.totalorder %s207_s21, %s342_s22  ;;  %p348_p12 = scmp.lt.s32.totalorder %s342_s22, %s342_s22 }
  0x3c   :  { %239 = vmatpush3.bf16.msra.mxu0 %v265_v2 }
  0x3d   :  { %240 = vmatprep.subr.bf16.mxu0 %v375_v0  ;;  %p349_p13 = por %p348_p12, %p347_p11 }
  0x3f   :  { %p350_p0 = pnand %p349_p13, %p343_p10 }
  0x40   :  { %241 = vmatpush3.bf16.msra.mxu0 %v266_v3 }
  0x41   :  { %242 = vmatprep.subr.bf16.mxu0 %v375_v0 }
  0x44   :  { %243 = vmatpush3.bf16.msra.mxu0 %v267_v4 }
  0x45   :  { %244 = vmatprep.subr.bf16.mxu0 %v375_v0 }
  0x48   :  { %245 = vmatpush3.bf16.msra.mxu0 %v268_v5 }
  0x49   :  { %246 = vmatprep.subr.bf16.mxu0 %v375_v0 }
  0x4c   :  { %247 = vmatpush3.bf16.msra.mxu0 %v269_v6 }
  0x4d   :  { %248 = vmatprep.subr.bf16.mxu0 %v375_v0 }
  0x50   :  { %249 = vmatpush3.bf16.msra.mxu0 %v270_v7 }
  0x51   :  { %250 = vmatprep.subr.bf16.mxu0 %v375_v0 }
  0x54   :  { %251 = vmatpush3.bf16.msra.mxu0 %v271_v8 }
  0x57   :  { %253 = vmatmul.mubr.bf16.vlgmr.msra.gmra.mrb[0].mxu0 %v53_v9 }
 0x12a   :  { %v157_v13 = vpop.f32.mrb[0].mxu0 }
 0x12b   :  { %v158_v15 = vadd.f32 %v216_v12, %v157_v13  ;;  %v254_v16 = vpop.f32.mrb[1].mxu0 }
 0x12c   :  { %v160_v17 = vpop.f32.mrb[2].mxu0 }
 0x12d   :  { %v167_v18 = vmul.f32 %v166_v14, %v158_v15  ;;  %v255_v19 = vpop.f32.mrb[3].mxu0 }
 0x12f   :  { %v168_v20 = vrot.slane %v167_v18, 4 }
 0x131   :  { %v169_v21 = vadd.f32 %v168_v20, %v167_v18 }
 0x133   :  { %v170_v22 = vrot.slane %v169_v21, 2 }
 0x135   :  { %v171_v23 = vadd.f32 %v170_v22, %v169_v21 }
 0x137   :  { %v172_v24 = vrot.slane %v171_v23, 1 }
 0x139   :  { %v173_v25 = vadd.f32 %v172_v24, %v171_v23 }
 0x13b   :  { %v174_v26 = vsub.f32 %v158_v15, %v173_v25 }
 0x13d   :  { %v175_v27 = vmul.f32 %v174_v26, %v166_v14 }
 0x13f   :  { %v176_v28 = vmul.f32 %v175_v27, %v174_v26 }
 0x141   :  { %v177_v29 = vrot.slane %v176_v28, 4 }
 0x143   :  { %v178_v30 = vadd.f32 %v177_v29, %v176_v28 }
 0x145   :  { %v179_v31 = vrot.slane %v178_v30, 2 }
 0x147   :  { %v180_v32 = vadd.f32 %v179_v31, %v178_v30 }
 0x149   :  { %v181_v33 = vrot.slane %v180_v32, 1 }
 0x14b   :  { %v182_v34 = vadd.f32 %v181_v33, %v180_v32 }
 0x14d   :  { %v183_v35 = vadd.f32 1e-05, %v182_v34 }
 0x14f   :  { %272 = vrsqrt.f32 %v183_v35 }
 0x159   :  { %v273_v36 = vpop.eup %272 }
 0x15a   :  { %v185_v38 = vmul.f32 %v273_v36, %v174_v26 }
 0x15c   :  { %v191_v40 = vmul.f32 %v225_v37, %v185_v38 }
 0x15e   :  { %v197_v41 = vadd.f32 %v226_v39, %v191_v40 }
 0x160   :  { %274 = vtanh.f32 %v197_v41 }
 0x16a   :  { %v275_v42 = vpop.eup %274 }
 0x16b   :  { %199 = vst [vmem:[#allocation8] sm:$0xff] %v275_v42 }
 0x16c   :  { %353 = shalt.err (!%p350_p0)
}
 0x16d   :  { %s354_s25 = scalar_lea.hbm %s449_s3, 128 }
 0x16e   :  { %p355_p1 = scmp.ne.s32.totalorder %s449_s3, %s354_s25  ;;  %p358_p2 = scmp.lt.u32.totalorder %s354_s25, %s449_s3 }
 0x170   :  { %p360_p3 = pnand %p358_p2, %p355_p1 }
 0x172   :  { %363 = shalt.err (!%p360_p3)
}
 0x173   :  { %209 = dma.vmem_to_hbm [thread:$0]  %s207_s21, 128, %s449_s3, [#allocation4]  }
 0x174   :  { %368 = dma.done.wait [#allocation4], 128  }
 0x175   :  { %369 = vsyncadd [#allocation4], 4294967168 }
 0x176   :  { %213 = vsyncpa [#allocation3], 1 }
 0x177   :  { %214 = vsyncpa [#allocation6], 1 }
 0x178   :  { %215 = vsyncpa [#allocation4], 1 }

</bundles_post_ra>
